<compile_context>
chip_gen: v7x
topology: tpu7x:2x2x1
jax: 0.10.0
libtpu: 0.0.40
codegen_flags: <defaults>
</compile_context>

<pallas_src>
import functools

import numpy as np
import jax
import jax.numpy as jnp
from jax.experimental import pallas as pl
from jax.experimental.pallas import tpu as pltpu


# ----------------------------- small helpers ----------------------------------

def _fold_scale(w, scale):
    """Fold BN scale into a conv weight along its output-channel (last) axis."""
    return w * scale.reshape((1,) * (w.ndim - 1) + (-1,))


def _largest_divisor_leq(n, cap):
    cap = int(max(1, min(n, cap)))
    for t in range(cap, 0, -1):
        if n % t == 0:
            return t
    return n


def _vmem_limit_bytes():
    """~7/8 of the chip's physical VMEM (v5e/v6e: 128 MiB, v7x: 64 MiB), capped."""
    try:
        cap = int(pltpu.get_tpu_info().vmem_capacity_bytes)
    except Exception:
        cap = 64 * 1024 * 1024      # conservative fallback (works on every generation)
    return int(min(cap - cap // 8, 110 * 1024 * 1024))


# ----------------------------- Pallas kernels ----------------------------------

def _matmul_shift_relu_kernel(x_ref, w_ref, shift_ref, o_ref):
    """Fused 1x1 conv tile (bf16 matmul, f32 accumulate) + folded-BN shift + ReLU."""
    acc = jnp.dot(x_ref[...], w_ref[...], preferred_element_type=jnp.float32)
    o_ref[...] = jnp.maximum(acc + shift_ref[...], 0.0).astype(o_ref.dtype)


def conv1x1_bn_relu(x_nhwc, w_folded, shift, *, tm=512, tn=512):
    """x: (N,H,W,Cin), w_folded: (Cin,Cout) with BN scale folded in, shift: (Cout,)."""
    N, H, W, Cin = x_nhwc.shape
    Cout = w_folded.shape[1]
    M = N * H * W
    x2d = x_nhwc.reshape(M, Cin).astype(jnp.bfloat16)
    w_bf = w_folded.astype(jnp.bfloat16)
    shift2d = shift.reshape(1, Cout).astype(jnp.float32)
    tm = min(tm, M)
    tn = min(tn, Cout)
    grid = (pl.cdiv(M, tm), pl.cdiv(Cout, tn))
    out = pl.pallas_call(
        _matmul_shift_relu_kernel,
        out_shape=jax.ShapeDtypeStruct((M, Cout), jnp.float32),
        grid=grid,
        in_specs=[
            pl.BlockSpec((tm, Cin), lambda i, j: (i, 0)),
            pl.BlockSpec((Cin, tn), lambda i, j: (0, j)),
            pl.BlockSpec((1, tn), lambda i, j: (0, j)),
        ],
        out_specs=pl.BlockSpec((tm, tn), lambda i, j: (i, j)),
        compiler_params=pltpu.CompilerParams(
            dimension_semantics=("parallel", "parallel"),
            vmem_limit_bytes=_vmem_limit_bytes()),
    )(x2d, w_bf, shift2d)
    return out.reshape(N, H, W, Cout)


def _fused_aspp_kernel(x1_ref, w11_ref, sh11_ref, wa_ref, sha_ref,
                       cdw_ref, cdsh_ref, xp_hbm, o_ref,
                       xwin_ref, cat_ref, dma_sem,
                       *, TH, W, Cin, dmax, c_gave, c_c11, branches, pair_taps):
    """One (batch, row-tile) grid step of the fused ASPP forward.

    x1_ref : (TH, W, c_gave)        upsampled gave_pool branch (already BN+ReLU), bf16
    w11_ref: (Cin, c_c11)           1x1-conv weight, BN scale folded, bf16
    wa_ref : (9*Cin, sum(couts))    dilated-conv weights, tap-major rows, scale folded, bf16
    cdw_ref: (1280, Cfin)           catdown weight (rows = gave|1x1|a1|a2|a3|a4), bf16
    xp_hbm : (N, Hp, Wp, Cin)       zero-padded input, bf16, left in HBM (pl.ANY)
    xwin_ref:(TH+2*dmax, Wp, Cin)   VMEM halo window for this row tile
    cat_ref: (TH*W, 1280)           VMEM bf16 concat buffer -> single K=1280 catdown matmul
    o_ref  : (TH, W, Cfin)          output tile, f32
    """
    n = pl.program_id(0)
    i = pl.program_id(1)
    THp = TH + 2 * dmax
    M = TH * W
    Cfin = o_ref.shape[-1]

    # --- manual halo DMA: rows [i*TH, i*TH + TH + 2*dmax) of the padded frame ---
    cp = pltpu.make_async_copy(xp_hbm.at[n, pl.ds(i * TH, THp)], xwin_ref, dma_sem)
    cp.start()

    # --- gave_pool branch (already activated in the wrapper): concat slot 0 ---
    cat_ref[:, 0:c_gave] = x1_ref[...].reshape(M, c_gave).astype(cat_ref.dtype)

    cp.wait()

    # --- 1x1 conv branch ---
    xc = xwin_ref[pl.ds(dmax, TH), pl.ds(dmax, W), :].reshape(M, Cin)
    y = jnp.dot(xc, w11_ref[...], preferred_element_type=jnp.float32)
    cat_ref[:, c_gave:c_gave + c_c11] = jnp.maximum(
        y + sh11_ref[...], 0.0).astype(cat_ref.dtype)

    # --- dilated 3x3 branches: direct tap matmuls, f32 accumulation (no im2col) ---
    # When Cin < 256 two taps are stacked per matmul so K >= 256 (v6e/v7x MXU depth);
    # at Cin >= 256 per-tap K already fills the MXU.
    if pair_taps:
        groups = ((0, 1), (2, 3), (4, 5), (6, 7), (8,))
    else:
        groups = tuple((t,) for t in range(9))

    def tap_slice(t, d):
        r = dmax + (t // 3 - 1) * d        # static offsets inside the halo window
        c = dmax + (t % 3 - 1) * d
        return xwin_ref[pl.ds(r, TH), pl.ds(c, W), :].reshape(M, Cin)

    for (d, cout, woff, cdoff) in branches:
        acc = None
        for grp in groups:
            xs = [tap_slice(t, d) for t in grp]
            xg = xs[0] if len(xs) == 1 else jnp.concatenate(xs, axis=-1)
            t0 = grp[0]
            wg = wa_ref[t0 * Cin:(t0 + len(grp)) * Cin, woff:woff + cout]
            part = jnp.dot(xg, wg, preferred_element_type=jnp.float32)
            acc = part if acc is None else acc + part
        cat_ref[:, cdoff:cdoff + cout] = jnp.maximum(
            acc + sha_ref[:, woff:woff + cout], 0.0).astype(cat_ref.dtype)

    # --- single catdown matmul (K = 1280) + folded-BN shift + ReLU ---
    out = jnp.dot(cat_ref[...], cdw_ref[...], preferred_element_type=jnp.float32)
    o_ref[...] = (jnp.maximum(out + cdsh_ref[...], 0.0)
                  .reshape(TH, W, Cfin).astype(o_ref.dtype))


def fused_aspp_conv(x_nhwc, x1_nhwc, P, dils, *, row_tile=None):
    """1x1 branch + 4 dilated branches + concat + catdown, all in one pallas_call."""
    N, H, W, Cin = x_nhwc.shape
    dmax = max(dils)
    Wp = W + 2 * dmax
    c_gave = x1_nhwc.shape[-1]

    # fold BN scales into conv weights; matmul operands in bf16
    w11 = _fold_scale(P['c11_w'], P['c11_scale']).astype(jnp.bfloat16)        # (Cin, 512)
    sh11 = P['c11_shift'].reshape(1, -1).astype(jnp.float32)
    c_c11 = int(w11.shape[1])

    wa_parts, sha_parts, couts = [], [], []
    for name in ('a1', 'a2', 'a3', 'a4'):
        w = _fold_scale(P[name + '_w'], P[name + '_scale'])                    # (3,3,Cin,co)
        co = int(w.shape[-1])
        wa_parts.append(w.reshape(9 * Cin, co))
        sha_parts.append(P[name + '_shift'])
        couts.append(co)
    wa = jnp.concatenate(wa_parts, axis=1).astype(jnp.bfloat16)                # (9*Cin, 640)
    sha = jnp.concatenate(sha_parts).reshape(1, -1).astype(jnp.float32)        # (1, 640)
    Csum = int(sum(couts))

    cdw = _fold_scale(P['cd_w'], P['cd_scale']).astype(jnp.bfloat16)           # (1280, 512)
    cdsh = P['cd_shift'].reshape(1, -1).astype(jnp.float32)
    Ccat, Cfin = int(cdw.shape[0]), int(cdw.shape[1])
    assert Ccat == c_gave + c_c11 + Csum, (Ccat, c_gave, c_c11, Csum)

    # per-branch column offsets inside wa / row offsets inside cdw (concat order of module)
    woffs = [int(v) for v in np.cumsum([0] + couts[:-1])]
    cdoffs = [int(v) for v in np.cumsum([c_gave + c_c11] + couts[:-1])]
    branches = tuple(zip(dils, couts, woffs, cdoffs))

    # Row tiling of the output; keep >=2 row tiles so the "parallel" row axis can feed
    # both v7x TensorCores even at batch 1.
    if row_tile is None:
        row_tile = max(1, 2048 // max(W, 1))     # aim for ~2k output pixels per grid step
    if H >= 2:
        row_tile = min(row_tile, max(1, H // 2))
    TH = _largest_divisor_leq(H, row_tile)
    n_h = H // TH
    THp = TH + 2 * dmax

    # padded input stays in HBM; only the per-tile halo window is DMA'd into VMEM
    xp = jnp.pad(x_nhwc, ((0, 0), (dmax, dmax), (dmax, dmax), (0, 0))).astype(jnp.bfloat16)
    x1_bf = x1_nhwc.astype(jnp.bfloat16)

    kern = functools.partial(
        _fused_aspp_kernel, TH=TH, W=W, Cin=Cin, dmax=dmax,
        c_gave=c_gave, c_c11=c_c11, branches=branches,
        pair_taps=(Cin < 256))

    out = pl.pallas_call(
        kern,
        out_shape=jax.ShapeDtypeStruct((N, H, W, Cfin), jnp.float32),
        grid=(N, n_h),
        in_specs=[
            pl.BlockSpec((None, TH, W, c_gave), lambda n, i: (n, i, 0, 0)),
            pl.BlockSpec((Cin, c_c11), lambda n, i: (0, 0)),
            pl.BlockSpec((1, c_c11), lambda n, i: (0, 0)),
            pl.BlockSpec((9 * Cin, Csum), lambda n, i: (0, 0)),
            pl.BlockSpec((1, Csum), lambda n, i: (0, 0)),
            pl.BlockSpec((Ccat, Cfin), lambda n, i: (0, 0)),
            pl.BlockSpec((1, Cfin), lambda n, i: (0, 0)),
            pl.BlockSpec(memory_space=pl.ANY),     # padded input left in HBM (halo DMA in-kernel)
        ],
        out_specs=pl.BlockSpec((None, TH, W, Cfin), lambda n, i: (n, i, 0, 0)),
        scratch_shapes=[
            pltpu.VMEM((THp, Wp, Cin), jnp.bfloat16),     # row-halo window
            pltpu.VMEM((TH * W, Ccat), jnp.bfloat16),     # concat buffer -> one K=1280 matmul
            pltpu.SemaphoreType.DMA(()),
        ],
        compiler_params=pltpu.CompilerParams(
            dimension_semantics=("parallel", "parallel"),
            vmem_limit_bytes=_vmem_limit_bytes()),
    )(x1_bf, w11, sh11, wa, sha, cdw, cdsh, xp)
    return out


# ------------------------------- JAX glue ---------------------------------------

def adaptive_avg_pool2d_nhwc(x, out_size):
    """Exact PyTorch AdaptiveAvgPool2d bin semantics (floor/ceil bin edges)."""
    N, H, W, C = x.shape
    oh, ow = out_size
    rows = []
    for i in range(oh):
        hs, he = (i * H) // oh, -((-(i + 1) * H) // oh)
        cols = []
        for j in range(ow):
            ws, we = (j * W) // ow, -((-(j + 1) * W) // ow)
            cols.append(jnp.mean(x[:, hs:he, ws:we, :], axis=(1, 2)))
        rows.append(jnp.stack(cols, axis=1))
    return jnp.stack(rows, axis=1)  # (N, oh, ow, C)


def bilinear_matrix(out_size, in_size):
    """Interpolation matrix for F.interpolate(mode='bilinear', align_corners=True)."""
    if out_size == 1:
        src = jnp.zeros((1,), jnp.float32)
    else:
        src = jnp.arange(out_size, dtype=jnp.float32) * (in_size - 1) / (out_size - 1)
    i0 = jnp.clip(jnp.floor(src).astype(jnp.int32), 0, in_size - 1)
    i1 = jnp.clip(i0 + 1, 0, in_size - 1)
    frac = src - i0.astype(jnp.float32)
    return ((1.0 - frac)[:, None] * jax.nn.one_hot(i0, in_size, dtype=jnp.float32)
            + frac[:, None] * jax.nn.one_hot(i1, in_size, dtype=jnp.float32))


def aspp_forward(x_nchw, P, *, row_tile=None):
    """Pallas-backed forward of _ASPPModule_v2 (os=8 -> rates [3, 2, 6, 12, 18])."""
    x = jnp.transpose(x_nchw, (0, 2, 3, 1))  # NCHW -> NHWC
    N, H, W, _ = x.shape

    # gave_pool: AdaptiveAvgPool2d(3) -> 1x1 conv+BN+ReLU (Pallas) -> bilinear up (align_corners)
    pooled = adaptive_avg_pool2d_nhwc(x, (3, 3))
    g = conv1x1_bn_relu(pooled, _fold_scale(P['gave_w'], P['gave_scale']), P['gave_shift'])
    x1 = jnp.einsum('hi,wj,nijc->nhwc', bilinear_matrix(H, 3), bilinear_matrix(W, 3), g)

    # 1x1 branch, 4 dilated branches, concat + catdown: one fused Pallas kernel
    out = fused_aspp_conv(x, x1, P, dils=(2, 6, 12, 18), row_tile=row_tile)
    return jnp.transpose(out, (0, 3, 1, 2))  # NHWC -> NCHW


# ------------------------ pure-JAX reference (for checking) ---------------------

def reference_forward(x_nchw, P):
    """XLA reference with the same bf16-operand / f32-accumulation policy as the kernels."""
    bf16, f32 = jnp.bfloat16, jnp.float32
    x = jnp.transpose(x_nchw, (0, 2, 3, 1))
    N, H, W, _ = x.shape

    def c1(xx, w, s, b):
        y = jnp.einsum('nhwc,cd->nhwd', xx.astype(bf16),
                       _fold_scale(w, s).astype(bf16), preferred_element_type=f32)
        return jnp.maximum(y + b, 0.0)

    def c3(xx, w, s, b, d):
        y = jax.lax.conv_general_dilated(
            xx.astype(bf16), _fold_scale(w, s).astype(bf16), (1, 1),
            [(d, d), (d, d)], rhs_dilation=(d, d),
            dimension_numbers=('NHWC', 'HWIO', 'NHWC'),
            preferred_element_type=f32)
        return jnp.maximum(y + b, 0.0)

    pooled = adaptive_avg_pool2d_nhwc(x, (3, 3))
    g = c1(pooled, P['gave_w'], P['gave_scale'], P['gave_shift'])
    x1 = jnp.einsum('hi,wj,nijc->nhwc', bilinear_matrix(H, 3), bilinear_matrix(W, 3), g)
    cat = jnp.concatenate([
        x1,
        c1(x, P['c11_w'], P['c11_scale'], P['c11_shift']),
        c3(x, P['a1_w'], P['a1_scale'], P['a1_shift'], 2),
        c3(x, P['a2_w'], P['a2_scale'], P['a2_shift'], 6),
        c3(x, P['a3_w'], P['a3_scale'], P['a3_shift'], 12),
        c3(x, P['a4_w'], P['a4_scale'], P['a4_shift'], 18),
    ], axis=-1)
    out = jnp.maximum(
        jnp.einsum('nhwc,cd->nhwd', cat.astype(bf16),
                   _fold_scale(P['cd_w'], P['cd_scale']).astype(bf16),
                   preferred_element_type=f32) + P['cd_shift'], 0.0)
    return jnp.transpose(out, (0, 3, 1, 2))


# ------------------------------ parameter init ----------------------------------

def conv_w(key, shape):
    fan_in = int(np.prod(shape[:-1]))
    return jax.random.normal(key, shape, jnp.float32) * (1.0 / np.sqrt(fan_in))


def make_bn(key, c, eps=1e-5):
    k1, k2, k3, k4 = jax.random.split(key, 4)
    gamma = 1.0 + 0.1 * jax.random.normal(k1, (c,), jnp.float32)
    beta = 0.1 * jax.random.normal(k2, (c,), jnp.float32)
    mean = 0.1 * jax.random.normal(k3, (c,), jnp.float32)
    var = jnp.abs(jax.random.normal(k4, (c,), jnp.float32)) + 0.5
    scale = gamma / jnp.sqrt(var + eps)
    shift = beta - mean * scale
    return scale, shift


if __name__ == "__main__":
    # Small shapes consistent with the module (in_planes shrunk 2048 -> 128 so every
    # channel split stays 128-lane aligned; branch output channels 128/512/256/128/128/128
    # and catdown 1280->512 are fixed by the module definition).
    N, Cin, H, W = 2, 128, 12, 12
    key = jax.random.PRNGKey(0)
    keys = jax.random.split(key, 16)
    x = jax.random.normal(keys[0], (N, Cin, H, W), jnp.float32)

    P = {}
    P['gave_w'] = conv_w(keys[1], (Cin, 128))
    P['gave_scale'], P['gave_shift'] = make_bn(keys[2], 128)
    P['c11_w'] = conv_w(keys[3], (Cin, 512))
    P['c11_scale'], P['c11_shift'] = make_bn(keys[4], 512)
    P['a1_w'] = conv_w(keys[5], (3, 3, Cin, 256))
    P['a1_scale'], P['a1_shift'] = make_bn(keys[6], 256)
    P['a2_w'] = conv_w(keys[7], (3, 3, Cin, 128))
    P['a2_scale'], P['a2_shift'] = make_bn(keys[8], 128)
    P['a3_w'] = conv_w(keys[9], (3, 3, Cin, 128))
    P['a3_scale'], P['a3_shift'] = make_bn(keys[10], 128)
    P['a4_w'] = conv_w(keys[11], (3, 3, Cin, 128))
    P['a4_scale'], P['a4_shift'] = make_bn(keys[12], 128)
    P['cd_w'] = conv_w(keys[13], (5 * 256, 2 * 256))
    P['cd_scale'], P['cd_shift'] = make_bn(keys[14], 512)

    # row_tile=6 -> fused-kernel grid (batch, row-tile) = (2, 2) so the tiled / halo-DMA
    # path is exercised.
    out = jax.block_until_ready(aspp_forward(x, P, row_tile=6))
    ref = jax.block_until_ready(reference_forward(x, P))

    assert out.shape == (N, 2 * 256, H, W), out.shape
    assert bool(jnp.all(jnp.isfinite(out)))
    err = float(jnp.max(jnp.abs(out - ref)))
    mag = float(jnp.max(jnp.abs(ref))) + 1e-6
    assert err <= 2e-2 * mag + 1e-2, f"mismatch vs reference: max_abs_err={err}, ref_mag={mag}"

    print("KERNEL_OK")
</pallas_src>

<mosaic_0001>
module attributes {stable_mosaic.version = 11 : i64} {
  func.func @_matmul_shift_relu_kernel(%arg0: i32, %arg1: i32, %arg2: memref<18x128xbf16, #tpu.memory_space<vmem>>, %arg3: memref<128x128xbf16, #tpu.memory_space<vmem>>, %arg4: memref<1x128xf32, #tpu.memory_space<vmem>>, %arg5: memref<18x128xf32, #tpu.memory_space<vmem>>) attributes {dimension_semantics = [#tpu.dimension_semantics<parallel>, #tpu.dimension_semantics<parallel>], iteration_bounds = array<i64: 1, 1>, scalar_prefetch = 0 : i64, scratch_operands = 0 : i64, tpu.core_type = #tpu.core_type<tc>, window_params = [{transform_indices = @transform_0, window_bounds = array<i64: 18, 128>}, {transform_indices = @transform_1, window_bounds = array<i64: 128, 128>}, {transform_indices = @transform_2, window_bounds = array<i64: 1, 128>}, {transform_indices = @transform_3, window_bounds = array<i64: 18, 128>}]} {
    %c0 = arith.constant 0 : index
    %c0_0 = arith.constant 0 : index
    %0 = vector.load %arg2[%c0, %c0_0] : memref<18x128xbf16, #tpu.memory_space<vmem>>, vector<18x128xbf16>
    %c0_1 = arith.constant 0 : index
    %c0_2 = arith.constant 0 : index
    %1 = vector.load %arg3[%c0_1, %c0_2] : memref<128x128xbf16, #tpu.memory_space<vmem>>, vector<128x128xbf16>
    %cst = arith.constant dense<0.000000e+00> : vector<18x128xf32>
    %2 = tpu.matmul %0, %1, %cst {dimension_numbers = #tpu.dot_dimension_numbers<[1], [0], [0], [1], [0, 0, 1, 1], [], []>} : vector<18x128xbf16>, vector<128x128xbf16>, vector<18x128xf32> -> vector<18x128xf32>
    %c0_3 = arith.constant 0 : index
    %c0_4 = arith.constant 0 : index
    %3 = vector.load %arg4[%c0_3, %c0_4] : memref<1x128xf32, #tpu.memory_space<vmem>>, vector<1x128xf32>
    %4 = vector.broadcast %3 : vector<1x128xf32> to vector<18x128xf32>
    %5 = arith.addf %2, %4 : vector<18x128xf32>
    %cst_5 = arith.constant 0.000000e+00 : f32
    %6 = vector.broadcast %cst_5 : f32 to vector<18x128xf32>
    %7 = arith.maximumf %5, %6 : vector<18x128xf32>
    %c0_6 = arith.constant 0 : index
    %c0_7 = arith.constant 0 : index
    %8 = vector.load %arg5[%c0_6, %c0_7] : memref<18x128xf32, #tpu.memory_space<vmem>>, vector<18x128xf32>
    tpu.vector_store %arg5[%c0_6, %c0_7], %7 {strides = array<i32>} : memref<18x128xf32, #tpu.memory_space<vmem>>, vector<18x128xf32>,
    return
  }
  func.func @transform_0(%arg0: i32, %arg1: i32) -> (i32, i32) {
    %c0_i32 = arith.constant 0 : i32
    %c0_i32_0 = arith.constant 0 : i32
    return %arg0, %c0_i32 : i32, i32
  }
  func.func @transform_1(%arg0: i32, %arg1: i32) -> (i32, i32) {
    %c0_i32 = arith.constant 0 : i32
    %c0_i32_0 = arith.constant 0 : i32
    return %c0_i32, %arg1 : i32, i32
  }
  func.func @transform_2(%arg0: i32, %arg1: i32) -> (i32, i32) {
    %c0_i32 = arith.constant 0 : i32
    %c0_i32_0 = arith.constant 0 : i32
    return %c0_i32, %arg1 : i32, i32
  }
  func.func @transform_3(%arg0: i32, %arg1: i32) -> (i32, i32) {
    %c0_i32 = arith.constant 0 : i32
    return %arg0, %arg1 : i32, i32
  }
}

</mosaic_0001>

<bundles_post_ra>
// kernel: tpu_custom_call.1
= control target key start
LH: loop header
LB: loop body
LE: loop exit
PB: predicated region body
PF: predicated region fallthrough
CT: control target
= control target key end

     0   :  { %8 = vsyncpa [#allocation3], 0  ;;  %s396_s0 = inlined_call_operand.hbm [shape: bf16[18,128], index: 0, kind: input, shape index: {}]   ;;  %s397_s1 = inlined_call_operand.hbm [shape: bf16[128,128], index: 1, kind: input, shape index: {}]   ;;  %s398_s2 = inlined_call_operand.vmem [shape: f32[1,128], index: 2, kind: input, shape index: {}]   ;;  %s399_s3 = inlined_call_operand.hbm [shape: f32[18,128], index: 3, kind: output, shape index: {}]  }
   0x1   :  { %9 = vsyncpa [#allocation6], 0 }
   0x2   :  { %10 = vsyncpa [#allocation4], 0  ;;  %s330_s12 = smov [#allocation2]   ;;  %s258_s16 = scalar_lea.hbm %s396_s0, 192 }
   0x3   :  { %s16_s13 = sshll.u32 %s330_s12, 4  ;;  %p259_p0 = scmp.ne.s32.totalorder %s396_s0, %s258_s16  ;;  %s17_s13 = int_to_ptr.vmem [resolvable:$true] %s16_s13 }
   0x4   :  { %p262_p1 = scmp.lt.u32.totalorder %s258_s16, %s396_s0 }
   0x6   :  { %p264_p2 = pnand %p262_p1, %p259_p0 }
   0x8   :  { %267 = shalt.err (!%p264_p2)
}
   0x9   :  { %s268_s21 = scalar_lea.vmem %s17_s13, 192  ;;  %p273_p4 = scmp.lt.s32.totalorder %s17_s13, %s17_s13 }
   0xa   :  { %p269_p3 = scmp.ne.s32.totalorder %s17_s13, %s268_s21  ;;  %p274_p5 = scmp.lt.s32.totalorder %s268_s21, %s268_s21 }
   0xc   :  { %p275_p6 = por %p274_p5, %p273_p4 }
   0xe   :  { %p276_p7 = pnand %p275_p6, %p269_p3 }
  0x10   :  { %279 = shalt.err (!%p276_p7)
}
  0x11   :  { %s331_s22 = smov 64   ;;  %s332_s23 = smov 4  }
  0x12   :  { %22 = dma.hbm_to_vmem [thread:$0]  %s396_s0, 192, %s17_s13, [#allocation3], %s331_s22, %s331_s22, %s332_s23  }
  0x13   :  { %s333_s26 = smov [#allocation5]   ;;  %s280_s30 = scalar_lea.hbm %s397_s1, 1024 }
  0x14   :  { %s28_s27 = sshll.u32 %s333_s26, 4  ;;  %p281_p8 = scmp.ne.s32.totalorder %s397_s1, %s280_s30  ;;  %s29_s27 = int_to_ptr.vmem [resolvable:$true] %s28_s27 }
  0x15   :  { %p284_p9 = scmp.lt.u32.totalorder %s280_s30, %s397_s1 }
  0x17   :  { %p286_p10 = pnand %p284_p9, %p281_p8 }
  0x19   :  { %289 = shalt.err (!%p286_p10)
}
  0x1a   :  { %s290_s8 = scalar_lea.vmem %s29_s27, 1024  ;;  %p295_p12 = scmp.lt.s32.totalorder %s29_s27, %s29_s27 }
  0x1b   :  { %p291_p11 = scmp.ne.s32.totalorder %s29_s27, %s290_s8  ;;  %p296_p13 = scmp.lt.s32.totalorder %s290_s8, %s290_s8 }
  0x1d   :  { %p297_p0 = por %p296_p13, %p295_p12 }
  0x1f   :  { %p298_p1 = pnand %p297_p0, %p291_p11 }
  0x21   :  { %301 = shalt.err (!%p298_p1)
}
  0x22   :  { %34 = dma.hbm_to_vmem [thread:$0]  %s397_s1, 1024, %s29_s27, [#allocation6], %s331_s22, %s331_s22, %s332_s23  }
  0x23   :  { %324 = dma.done.wait [#allocation3], 192  }
  0x24   :  { %325 = vsyncadd [#allocation3], 4294967104 }
  0x25   :  { %326 = dma.done.wait [#allocation6], 1024  }
  0x26   :  { %327 = vsyncadd [#allocation6], 4294966272  ;;  %v248_v0 = vld [vmem:[#allocation5] sm:$0xff]   ;;  %v249_v1 = vld [vmem:[#allocation5 + $0x8] sm:$0xff]   ;;  %s334_s11 = smov [#allocation7]  }
  0x27   :  { %221 = vmatprep.subr.bf16.mxu0 %v248_v0  ;;  %v250_v2 = vld [vmem:[#allocation5 + $0x10] sm:$0xff]   ;;  %v251_v3 = vld [vmem:[#allocation5 + $0x18] sm:$0xff]   ;;  %v252_v5 = vld [vmem:[#allocation5 + $0x20] sm:$0xff]   ;;  %s187_s12 = sshll.u32 %s334_s11, 4  ;;  %s188_s12 = int_to_ptr.vmem [resolvable:$true] %s187_s12 }
  0x28   :  { %222 = vmatpush3.bf16.msra.mxu0 %v248_v0  ;;  %v256_v4 = vld [vmem:[#allocation2] sm:$0xff]   ;;  %v253_v6 = vld [vmem:[#allocation5 + $0x28] sm:$0xff]   ;;  %v257_v9 = vld [vmem:[#allocation2 + $0x8] ss:$0 sps:$4 sm:$0x11]   ;;  %s302_s13 = scalar_lea.vmem %s188_s12, 384  ;;  %p307_p3 = scmp.lt.s32.totalorder %s188_s12, %s188_s12 }
  0x29   :  { %223 = vmatprep.subr.bf16.mxu0 %v249_v1  ;;  %237 = vmatprep.mubr.bf16.mxu0 %v256_v4  ;;  %v254_v7 = vld [vmem:[#allocation5 + $0x30] sm:$0xff]   ;;  %v255_v8 = vld [vmem:[#allocation5 + $0x38] sm:$0xff]   ;;  %p303_p2 = scmp.ne.s32.totalorder %s188_s12, %s302_s13  ;;  %p308_p4 = scmp.lt.s32.totalorder %s302_s13, %s302_s13 }
  0x2a   :  { %v200_v10 = vld [vmem:[%s398_s2] ss:$0 sm:$0xff] }
  0x2b   :  { %p309_p5 = por %p308_p4, %p307_p3 }
  0x2c   :  { %224 = vmatpush3.bf16.msra.mxu0 %v249_v1 }
  0x2d   :  { %225 = vmatprep.subr.bf16.mxu0 %v250_v2  ;;  %p310_p6 = pnand %p309_p5, %p303_p2 }
  0x30   :  { %226 = vmatpush3.bf16.msra.mxu0 %v250_v2 }
  0x31   :  { %227 = vmatprep.subr.bf16.mxu0 %v251_v3 }
  0x34   :  { %228 = vmatpush3.bf16.msra.mxu0 %v251_v3 }
  0x35   :  { %229 = vmatprep.subr.bf16.mxu0 %v252_v5 }
  0x38   :  { %230 = vmatpush3.bf16.msra.mxu0 %v252_v5 }
  0x39   :  { %231 = vmatprep.subr.bf16.mxu0 %v253_v6 }
  0x3c   :  { %232 = vmatpush3.bf16.msra.mxu0 %v253_v6 }
  0x3d   :  { %233 = vmatprep.subr.bf16.mxu0 %v254_v7 }
  0x40   :  { %234 = vmatpush3.bf16.msra.mxu0 %v254_v7 }
  0x41   :  { %235 = vmatprep.subr.bf16.mxu0 %v255_v8 }
  0x44   :  { %236 = vmatpush3.bf16.msra.mxu0 %v255_v8 }
  0x47   :  { %238 = vmatmul.mubr.bf16.vlgmr.msra.gmra.mrb[0].mxu0 %v257_v9 }
 0x11a   :  { %v239_v11 = vpop.f32.mrb[0].mxu0 }
 0x11b   :  { %v171_v12 = vadd.f32 %v239_v11, %v200_v10  ;;  %v162_v13 = vpop.f32.mrb[1].mxu0 }
 0x11c   :  { %v163_v14 = vadd.f32 %v200_v10, %v162_v13  ;;  %v240_v15 = vpop.f32.mrb[2].mxu0 }
 0x11d   :  { %v178_v16 = vmax.f32 %v171_v12, 0.0  ;;  %v165_v17 = vpop.f32.mrb[3].mxu0 }
 0x11e   :  { %v176_v18 = vmax.f32 %v163_v14, 0.0  ;;  %v166_v19 = vadd.f32 %v200_v10, %v165_v17 }
 0x11f   :  { %181 = vst [vmem:[#allocation7 + $0x10] sm:$0x3] %v178_v16 }
 0x120   :  { %179 = vst [vmem:[#allocation7] sm:$0xff] %v176_v18  ;;  %v177_v20 = vmax.f32 %v166_v19, 0.0 }
 0x122   :  { %180 = vst [vmem:[#allocation7 + $0x8] sm:$0xff] %v177_v20 }
 0x123   :  { %313 = shalt.err (!%p310_p6)
}
 0x124   :  { %s314_s15 = scalar_lea.hbm %s399_s3, 384 }
 0x125   :  { %p315_p7 = scmp.ne.s32.totalorder %s399_s3, %s314_s15  ;;  %p318_p8 = scmp.lt.u32.totalorder %s314_s15, %s399_s3 }
 0x127   :  { %p320_p9 = pnand %p318_p8, %p315_p7 }
 0x129   :  { %323 = shalt.err (!%p320_p9)
}
 0x12a   :  { %s335_s20 = smov 128   ;;  %s336_s21 = smov 8  }
 0x12b   :  { %193 = dma.vmem_to_hbm [thread:$0]  %s188_s12, 384, %s399_s3, [#allocation4], %s335_s20, %s335_s20, %s336_s21  }
 0x12c   :  { %328 = dma.done.wait [#allocation4], 384  }
 0x12d   :  { %329 = vsyncadd [#allocation4], 4294966912 }
 0x12e   :  { %197 = vsyncpa [#allocation3], 1 }
 0x12f   :  { %198 = vsyncpa [#allocation6], 1 }
 0x130   :  { %199 = vsyncpa [#allocation4], 1 }

</bundles_post_ra>
